<compile_context>
chip_gen: v7x
topology: tpu7x:2x2x1
jax: 0.10.0
libtpu: 0.0.40
codegen_flags: <defaults>
</compile_context>

<pallas_src>
import jax
import jax.numpy as jnp
from jax.experimental import pallas as pl
from jax.experimental.pallas import tpu as pltpu


def scale_free_distortion_kernel(p_i_ref, p_j_ref, p_i_t_ref, p_j_t_ref,
                                 d_row_ref, invden_row_ref, invden_col_ref,
                                 out_ref):
    nn = d_row_ref.shape[-1]                      # NN = N * N (static)
    n = int(round(nn ** 0.5))
    inv_count = 1.0 / float(nn - n)               # 1 / (N^2 - N)

    # --- pairwise Euclidean distances, direct differences (exact 0 on diag) --
    # column orientation: candidates, (NN, 1)
    diff_c = p_i_ref[...] - p_j_ref[...]                                  # (NN, E)
    d_col = jnp.sqrt(jnp.sum(diff_c * diff_c, axis=1, keepdims=True))     # (NN, 1)
    # row orientation: values, lane-dense (1, NN)
    diff_r = p_i_t_ref[...] - p_j_t_ref[...]                              # (E, NN)
    d_row = jnp.sqrt(jnp.sum(diff_r * diff_r, axis=0, keepdims=True))     # (1, NN)

    inv_row = invden_row_ref[...]                 # (1, NN) = 1 / (D + I), flat
    inv_col = invden_col_ref[...]                 # (NN, 1)

    dn_row = d_row * inv_row                      # values      (1, NN); 0 on diag
    dn_col = d_col * inv_col                      # candidates  (NN, 1)

    # sum(alpha): masked-out entries are exactly 0, so plain sum is enough.
    total = jnp.sum(dn_row, keepdims=True)        # (1, 1)

    # S[i] = sum of positive values <= candidate i  (zeros contribute nothing).
    contrib = jnp.where(dn_row <= dn_col, dn_row, 0.0)      # (NN, NN), lane-dense
    s = jnp.sum(contrib, axis=1, keepdims=True)             # (NN, 1)  one lane reduce

    # a_i = min positive candidate with 2*S >= total  (== sort/cumsum rule).
    cand = jnp.logical_and(dn_col > 0.0, 2.0 * s >= total)  # (NN, 1)
    a_i = jnp.min(jnp.where(cand, dn_col, jnp.inf), keepdims=True)        # (1, 1)
    scale = 1.0 / a_i                             # exact divide, single element

    # Distortion of scale * prototypes: |scale*d - D| / (D + I), mean off-diag.
    dist = jnp.abs(scale * d_row - d_row_ref[...]) * inv_row              # (1, NN)
    out_ref[...] = jnp.sum(dist, keepdims=True) * inv_count


def scale_free_distortion(prototypes, D):
    N, E = prototypes.shape
    NN = N * N

    p = prototypes.astype(jnp.float32)
    Dm = D.astype(jnp.float32)
    inv_denom = 1.0 / (Dm + jnp.eye(N, dtype=jnp.float32))   # exact, in wrapper

    # Layout plumbing only (no compute hoisted): flat pair axis, both
    # orientations, so the kernel never reshapes/transposes.
    p_i = jnp.repeat(p, N, axis=0)         # (NN, E): pair k -> prototype k // N
    p_j = jnp.tile(p, (N, 1))              # (NN, E): pair k -> prototype k %  N
    p_i_t = p_i.T                          # (E, NN)
    p_j_t = p_j.T                          # (E, NN)
    d_row = Dm.reshape(1, NN)
    inv_row = inv_denom.reshape(1, NN)
    inv_col = inv_denom.reshape(NN, 1)

    cost = pl.CostEstimate(
        flops=int(6 * NN * E + 3 * NN * NN + 12 * NN),
        transcendentals=int(2 * NN),
        bytes_accessed=int(4 * (4 * NN * E + 3 * NN) + 4),
    )

    out = pl.pallas_call(
        scale_free_distortion_kernel,
        out_shape=jax.ShapeDtypeStruct((1, 1), jnp.float32),
        in_specs=[pl.BlockSpec(memory_space=pltpu.MemorySpace.VMEM)
                  for _ in range(7)],
        out_specs=pl.BlockSpec(memory_space=pltpu.MemorySpace.VMEM),
        cost_estimate=cost,
    )(p_i, p_j, p_i_t, p_j_t, d_row, inv_row, inv_col)
    return out[0, 0]


def reference(prototypes, D):
    """Pure-JAX (eager) replica of the PyTorch forward, incl. sort/cumsum."""
    N = D.shape[0]
    eye = jnp.eye(N, dtype=jnp.float32)
    d_euclid = jnp.sqrt(
        jnp.sum((prototypes[:, None, :] - prototypes[None, :, :]) ** 2, axis=-1))
    d = d_euclid / (D + eye)
    alpha = jnp.sort(d[d > 0])
    cumul = jnp.cumsum(alpha)
    idx = jnp.min(jnp.where(cumul >= alpha.sum() - cumul)[0])
    a_i = alpha[idx]
    scale = 1.0 / a_i
    sp = scale * prototypes
    sd = jnp.sqrt(jnp.sum((sp[:, None, :] - sp[None, :, :]) ** 2, axis=-1))
    dd = jnp.abs(sd - D) / (D + eye)
    return dd.sum() / (N * N - N)


if __name__ == "__main__":
    key = jax.random.PRNGKey(0)
    k1, k2 = jax.random.split(key)

    N, E = 8, 32
    # Deterministic valid metric D: pairwise distances of random base points.
    base = jax.random.normal(k1, (N, 3), dtype=jnp.float32)
    D = jnp.sqrt(jnp.sum((base[:, None, :] - base[None, :, :]) ** 2, axis=-1))
    prototypes = jax.random.normal(k2, (N, E), dtype=jnp.float32)

    out = jax.block_until_ready(scale_free_distortion(prototypes, D))
    ref = reference(prototypes, D)
    assert jnp.allclose(out, ref, rtol=1e-4, atol=1e-5), (float(out), float(ref))
    print("KERNEL_OK")
</pallas_src>

<mosaic_0001>
module attributes {stable_mosaic.version = 11 : i64} {
  func.func @scale_free_distortion_kernel(%arg0: memref<64x32xf32, #tpu.memory_space<vmem>>, %arg1: memref<64x32xf32, #tpu.memory_space<vmem>>, %arg2: memref<32x64xf32, #tpu.memory_space<vmem>>, %arg3: memref<32x64xf32, #tpu.memory_space<vmem>>, %arg4: memref<1x64xf32, #tpu.memory_space<vmem>>, %arg5: memref<1x64xf32, #tpu.memory_space<vmem>>, %arg6: memref<64x1xf32, #tpu.memory_space<vmem>>, %arg7: memref<1x1xf32, #tpu.memory_space<vmem>>) attributes {dimension_semantics = [], scalar_prefetch = 0 : i64, scratch_operands = 0 : i64, tpu.core_type = #tpu.core_type<tc>} {
    %c0 = arith.constant 0 : index
    %c0_0 = arith.constant 0 : index
    %0 = vector.load %arg0[%c0, %c0_0] : memref<64x32xf32, #tpu.memory_space<vmem>>, vector<64x32xf32>
    %c0_1 = arith.constant 0 : index
    %c0_2 = arith.constant 0 : index
    %1 = vector.load %arg1[%c0_1, %c0_2] : memref<64x32xf32, #tpu.memory_space<vmem>>, vector<64x32xf32>
    %2 = arith.subf %0, %1 : vector<64x32xf32>
    %3 = arith.mulf %2, %2 : vector<64x32xf32>
    %cst = arith.constant dense<0.000000e+00> : vector<64xf32>
    %4 = vector.multi_reduction <add>, %3, %cst [1] : vector<64x32xf32> to vector<64xf32>
    %5 = vector.shape_cast %4 : vector<64xf32> to vector<64x1xf32>
    %6 = math.sqrt %5 : vector<64x1xf32>
    %c0_3 = arith.constant 0 : index
    %c0_4 = arith.constant 0 : index
    %7 = vector.load %arg2[%c0_3, %c0_4] : memref<32x64xf32, #tpu.memory_space<vmem>>, vector<32x64xf32>
    %c0_5 = arith.constant 0 : index
    %c0_6 = arith.constant 0 : index
    %8 = vector.load %arg3[%c0_5, %c0_6] : memref<32x64xf32, #tpu.memory_space<vmem>>, vector<32x64xf32>
    %9 = arith.subf %7, %8 : vector<32x64xf32>
    %10 = arith.mulf %9, %9 : vector<32x64xf32>
    %cst_7 = arith.constant dense<0.000000e+00> : vector<64xf32>
    %11 = vector.multi_reduction <add>, %10, %cst_7 [0] : vector<32x64xf32> to vector<64xf32>
    %12 = vector.shape_cast %11 : vector<64xf32> to vector<1x64xf32>
    %13 = math.sqrt %12 : vector<1x64xf32>
    %c0_8 = arith.constant 0 : index
    %c0_9 = arith.constant 0 : index
    %14 = vector.load %arg5[%c0_8, %c0_9] : memref<1x64xf32, #tpu.memory_space<vmem>>, vector<1x64xf32>
    %c0_10 = arith.constant 0 : index
    %c0_11 = arith.constant 0 : index
    %15 = vector.load %arg6[%c0_10, %c0_11] : memref<64x1xf32, #tpu.memory_space<vmem>>, vector<64x1xf32>
    %16 = arith.mulf %13, %14 : vector<1x64xf32>
    %17 = arith.mulf %6, %15 : vector<64x1xf32>
    %18 = vector.shape_cast %16 : vector<1x64xf32> to vector<1x1x64xf32>
    %cst_12 = arith.constant dense<0.000000e+00> : vector<1xf32>
    %19 = vector.multi_reduction <add>, %18, %cst_12 [1, 2] : vector<1x1x64xf32> to vector<1xf32>
    %20 = vector.shape_cast %19 : vector<1xf32> to vector<1x1x1xf32>
    %21 = vector.extract %20[0, 0, 0] : f32 from vector<1x1x1xf32>
    %22 = vector.broadcast %21 : f32 to vector<1x1xf32>
    %23 = vector.broadcast %16 : vector<1x64xf32> to vector<64x64xf32>
    %24 = vector.broadcast %17 : vector<64x1xf32> to vector<64x64xf32>
    %25 = arith.cmpf ole, %23, %24 : vector<64x64xf32>
    %cst_13 = arith.constant 0.000000e+00 : f32
    %26 = vector.shape_cast %16 : vector<1x64xf32> to vector<1x64xf32>
    %27 = vector.broadcast %26 : vector<1x64xf32> to vector<64x64xf32>
    %28 = vector.broadcast %cst_13 : f32 to vector<64x64xf32>
    %29 = arith.select %25, %27, %28 : vector<64x64xi1>, vector<64x64xf32>
    %cst_14 = arith.constant dense<0.000000e+00> : vector<64xf32>
    %30 = vector.multi_reduction <add>, %29, %cst_14 [1] : vector<64x64xf32> to vector<64xf32>
    %31 = vector.shape_cast %30 : vector<64xf32> to vector<64x1xf32>
    %cst_15 = arith.constant 0.000000e+00 : f32
    %32 = vector.broadcast %cst_15 : f32 to vector<64x1xf32>
    %33 = arith.cmpf ogt, %17, %32 : vector<64x1xf32>
    %cst_16 = arith.constant 2.000000e+00 : f32
    %34 = vector.broadcast %cst_16 : f32 to vector<64x1xf32>
    %35 = arith.mulf %34, %31 : vector<64x1xf32>
    %36 = vector.broadcast %22 : vector<1x1xf32> to vector<64x1xf32>
    %37 = arith.cmpf oge, %35, %36 : vector<64x1xf32>
    %38 = arith.andi %33, %37 : vector<64x1xi1>
    %cst_17 = arith.constant 0x7F800000 : f32
    %39 = vector.broadcast %cst_17 : f32 to vector<64x1xf32>
    %40 = arith.select %38, %17, %39 : vector<64x1xi1>, vector<64x1xf32>
    %41 = vector.shape_cast %40 : vector<64x1xf32> to vector<1x64x1xf32>
    %cst_18 = arith.constant dense<0x7F800000> : vector<1xf32>
    %42 = vector.multi_reduction <minimumf>, %41, %cst_18 [1, 2] : vector<1x64x1xf32> to vector<1xf32>
    %43 = vector.shape_cast %42 : vector<1xf32> to vector<1x1x1xf32>
    %44 = vector.extract %43[0, 0, 0] : f32 from vector<1x1x1xf32>
    %45 = vector.broadcast %44 : f32 to vector<1x1xf32>
    %cst_19 = arith.constant 1.000000e+00 : f32
    %46 = vector.broadcast %cst_19 : f32 to vector<1x1xf32>
    %47 = arith.divf %46, %45 : vector<1x1xf32>
    %48 = vector.broadcast %47 : vector<1x1xf32> to vector<1x64xf32>
    %49 = arith.mulf %48, %13 : vector<1x64xf32>
    %c0_20 = arith.constant 0 : index
    %c0_21 = arith.constant 0 : index
    %50 = vector.load %arg4[%c0_20, %c0_21] : memref<1x64xf32, #tpu.memory_space<vmem>>, vector<1x64xf32>
    %51 = arith.subf %49, %50 : vector<1x64xf32>
    %52 = math.absf %51 : vector<1x64xf32>
    %53 = arith.mulf %52, %14 : vector<1x64xf32>
    %54 = vector.shape_cast %53 : vector<1x64xf32> to vector<1x1x64xf32>
    %cst_22 = arith.constant dense<0.000000e+00> : vector<1xf32>
    %55 = vector.multi_reduction <add>, %54, %cst_22 [1, 2] : vector<1x1x64xf32> to vector<1xf32>
    %56 = vector.shape_cast %55 : vector<1xf32> to vector<1x1x1xf32>
    %57 = vector.extract %56[0, 0, 0] : f32 from vector<1x1x1xf32>
    %58 = vector.broadcast %57 : f32 to vector<1x1xf32>
    %cst_23 = arith.constant 0.0178571437 : f32
    %59 = vector.broadcast %cst_23 : f32 to vector<1x1xf32>
    %60 = arith.mulf %58, %59 : vector<1x1xf32>
    %c0_24 = arith.constant 0 : index
    %c0_25 = arith.constant 0 : index
    %61 = vector.load %arg7[%c0_24, %c0_25] : memref<1x1xf32, #tpu.memory_space<vmem>>, vector<1x1xf32>
    tpu.vector_store %arg7[%c0_24, %c0_25], %60 {strides = array<i32>} : memref<1x1xf32, #tpu.memory_space<vmem>>, vector<1x1xf32>,
    return
  }
}

</mosaic_0001>

<bundles_post_ra>
// kernel: tpu_custom_call.1
= control target key start
LH: loop header
LB: loop body
LE: loop exit
PB: predicated region body
PF: predicated region fallthrough
CT: control target
= control target key end

     0   :  { %vm59_vm0 = vcmask 261120   ;;  %s764_s0 = inlined_call_operand.vmem [shape: f32[64,32], index: 0, kind: input, shape index: {}]   ;;  %s765_s1 = inlined_call_operand.vmem [shape: f32[64,32], index: 1, kind: input, shape index: {}]   ;;  %s766_s2 = inlined_call_operand.vmem [shape: f32[32,64], index: 2, kind: input, shape index: {}]   ;;  %s767_s3 = inlined_call_operand.vmem [shape: f32[32,64], index: 3, kind: input, shape index: {}]   ;;  %s768_s4 = inlined_call_operand.vmem [shape: f32[1,64], index: 4, kind: input, shape index: {}]   ;;  %s769_s5 = inlined_call_operand.vmem [shape: f32[1,64], index: 5, kind: input, shape index: {}]   ;;  %s770_s6 = inlined_call_operand.vmem [shape: f32[64,1], index: 6, kind: input, shape index: {}]   ;;  %s771_s7 = inlined_call_operand.hbm [shape: f32[1,1], index: 7, kind: output, shape index: {}]  }
   0x1   :  { %v29_v0 = vld [vmem:[%s764_s0 + $0x10] sm:$0xff]  ;;  %v27_v2 = vld [vmem:[%s764_s0] sm:$0xff]  ;;  %v30_v5 = vld [vmem:[%s764_s0 + $0x18] sm:$0xff] }
   0x2   :  { %v37_v1 = vld [vmem:[%s765_s1 + $0x10] sm:$0xff]  ;;  %v35_v4 = vld [vmem:[%s765_s1] sm:$0xff]  ;;  %v38_v6 = vld [vmem:[%s765_s1 + $0x18] sm:$0xff] }
   0x3   :  { %v45_v3 = vsub.f32 %v29_v0, %v37_v1  ;;  %v43_v7 = vsub.f32 %v27_v2, %v35_v4  ;;  %v46_v8 = vsub.f32 %v30_v5, %v38_v6  ;;  %v28_v9 = vld [vmem:[%s764_s0 + $0x8] sm:$0xff]  ;;  %v31_v15 = vld [vmem:[%s764_s0 + $0x20] sm:$0xff]  ;;  %v33_v21 = vld [vmem:[%s764_s0 + $0x30] sm:$0xff] }
   0x4   :  { %v36_v10 = vld [vmem:[%s765_s1 + $0x8] sm:$0xff]  ;;  %v39_v16 = vld [vmem:[%s765_s1 + $0x20] sm:$0xff]  ;;  %v34_v22 = vld [vmem:[%s764_s0 + $0x38] sm:$0xff] }
   0x5   :  { %v32_v11 = vld [vmem:[%s764_s0 + $0x28] sm:$0xff]  ;;  %v53_v12 = vmul.f32 %v45_v3, %v45_v3  ;;  %v44_v13 = vsub.f32 %v28_v9, %v36_v10  ;;  %v51_v17 = vmul.f32 %v43_v7, %v43_v7  ;;  %v54_v18 = vmul.f32 %v46_v8, %v46_v8  ;;  %v41_v25 = vld [vmem:[%s765_s1 + $0x30] sm:$0xff]  ;;  %v42_v26 = vld [vmem:[%s765_s1 + $0x38] sm:$0xff] }
   0x6   :  { %v40_v14 = vld [vmem:[%s765_s1 + $0x28] sm:$0xff]  ;;  %v47_v20 = vsub.f32 %v31_v15, %v39_v16 }
   0x7   :  { %v48_v19 = vsub.f32 %v32_v11, %v40_v14  ;;  %v66_v23 = vsel %vm59_vm0, %v53_v12, 0.0  ;;  %v52_v24 = vmul.f32 %v44_v13, %v44_v13 }
   0x8   :  { %12 = vsyncpa [#allocation3], 0  ;;  %67 = vadd.xlane.f32.xlu1 %v66_v23  ;;  %v60_v27 = vsel %vm59_vm0, %v51_v17, 0.0  ;;  %v69_v28 = vsel %vm59_vm0, %v54_v18, 0.0  ;;  %v50_v30 = vsub.f32 %v34_v22, %v42_v26  ;;  %v55_v32 = vmul.f32 %v47_v20, %v47_v20  ;;  %v140_v43 = vld [vmem:[%s766_s2] sm:$0xff]  ;;  %v141_v45 = vld [vmem:[%s766_s2 + $0x8] sm:$0xff] }
   0x9   :  { %61 = vadd.xlane.f32.xlu0 %v60_v27  ;;  %v56_v29 = vmul.f32 %v48_v19, %v48_v19  ;;  %v63_v31 = vsel %vm59_vm0, %v52_v24, 0.0  ;;  %v49_v33 = vsub.f32 %v33_v21, %v41_v25  ;;  %v446_v40 = vmov 0   ;;  %v144_v44 = vld [vmem:[%s767_s3] sm:$0xff]  ;;  %v145_v46 = vld [vmem:[%s767_s3 + $0x8] sm:$0xff]  ;;  %v142_v50 = vld [vmem:[%s766_s2 + $0x10] sm:$0xff]  ;;  %s447_s17 = smov [#allocation2]  }
   0xa   :  { %v58_v35 = vmul.f32 %v50_v30, %v50_v30  ;;  %v72_v36 = vsel %vm59_vm0, %v55_v32, 0.0  ;;  %400 = vset.pattern.permute.xlu0 %v446_v40  ;;  %401 = vset.pattern.permute.xlu1 %v446_v40  ;;  %v148_v49 = vsub.f32 %v140_v43, %v144_v44  ;;  %v146_v51 = vld [vmem:[%s767_s3 + $0x10] sm:$0xff]  ;;  %v149_v52 = vsub.f32 %v141_v45, %v145_v46  ;;  %v143_v54 = vld [vmem:[%s766_s2 + $0x18] sm:$0xff]  ;;  %v178_v3 = vld [vmem:[%s770_s6] sm:$0xff]  ;;  %s384_s18 = sshll.u32 %s447_s17, 4  ;;  %s385_s18 = int_to_ptr.vmem [resolvable:$true] %s384_s18 }
   0xb   :  { %v75_v34 = vsel %vm59_vm0, %v56_v29, 0.0  ;;  %v57_v37 = vmul.f32 %v49_v33, %v49_v33  ;;  %v147_v55 = vld [vmem:[%s767_s3 + $0x18] sm:$0xff]  ;;  %v150_v56 = vsub.f32 %v142_v50, %v146_v51  ;;  %vm156_vm1 = vcmask 523264   ;;  %v179_v17 = vld [vmem:[%s770_s6 + $0x8] sm:$0xff]  ;;  %v182_v45 = vld [vmem:[%s770_s6 + $0x20] sm:$0xff]  ;;  %s422_s19 = scalar_lea.vmem %s385_s18, 16  ;;  %p427_p1 = scmp.lt.s32.totalorder %s385_s18, %s385_s18 }
   0xc   :  { %70 = vadd.xlane.f32.xlu1 %v69_v28  ;;  %v81_v38 = vsel %vm59_vm0, %v58_v35, 0.0  ;;  %v152_v57 = vmul.f32 %v148_v49, %v148_v49  ;;  %v153_v58 = vmul.f32 %v149_v52, %v149_v52  ;;  %v151_v62 = vsub.f32 %v143_v54, %v147_v55  ;;  %v180_v28 = vld [vmem:[%s770_s6 + $0x10] sm:$0xff]  ;;  %p423_p0 = scmp.ne.s32.totalorder %s385_s18, %s422_s19  ;;  %s426_s20 = scalar_lea.vmem %s385_s18, 32 }
   0xd   :  { %64 = vadd.xlane.f32.xlu0 %v63_v31  ;;  %v78_v39 = vsel %vm59_vm0, %v57_v37, 0.0  ;;  %v154_v0 = vmul.f32 %v150_v56, %v150_v56  ;;  %v181_v37 = vld [vmem:[%s770_s6 + $0x18] sm:$0xff]  ;;  %p428_p2 = scmp.lt.s32.totalorder %s426_s20, %s422_s19 }
   0xe   :  { %v157_v1 = vsel %vm156_vm1, %v152_v57, 0.0  ;;  %v158_v4 = vsel %vm156_vm1, %v153_v58, 0.0  ;;  %v155_v11 = vmul.f32 %v151_v62, %v151_v62 }
   0xf   :  { %v159_v14 = vadd.f32 %v158_v4, %v157_v1  ;;  %v160_v15 = vsel %vm156_vm1, %v154_v0, 0.0  ;;  %p429_p3 = por %p428_p2, %p427_p1 }
  0x10   :  { %76 = vadd.xlane.f32.xlu1 %v75_v34  ;;  %v162_v29 = vsel %vm156_vm1, %v155_v11, 0.0  ;;  %v673_v11 = vld [vmem:[%s769_s5] sm:$0x1] }
  0x11   :  { %73 = vadd.xlane.f32.xlu0 %v72_v36  ;;  %v161_v26 = vadd.f32 %v160_v15, %v159_v14  ;;  %v206_v15 = vlaneseq  ;;  %p430_p4 = pnand %p429_p3, %p423_p0 }
  0x13   :  { %v163_v35 = vadd.f32 %v162_v29, %v161_v26 }
  0x14   :  { %82 = vadd.xlane.f32.xlu1 %v81_v38 }
  0x15   :  { %79 = vadd.xlane.f32.xlu0 %v78_v39  ;;  %v164_v43 = vrot.slane %v163_v35, 4 }
  0x17   :  { %v165_v51 = vadd.f32 %v164_v43, %v163_v35 }
  0x19   :  { %v166_v58 = vrot.slane %v165_v51, 2 }
  0x1b   :  { %v167_v0 = vadd.f32 %v166_v58, %v165_v51 }
  0x1d   :  { %v168_v4 = vrot.slane %v167_v0, 1 }
  0x95   :  { %v544_v41 = vpop.xlane.xlu1 %67 }
  0x96   :  { %402 = vrsqrt.f32 %v544_v41  ;;  %v62_v42 = vpop.xlane.xlu0 %61  ;;  %vm100_vm5 = vcmp.eq.f32.partialorder %v544_v41, inf  ;;  %v103_v24 = vand.u32 2147483648, %v544_v41  ;;  %vm102_vm7 = vcmp.eq.f32.partialorder %v544_v41, 0.0 }
  0x97   :  { %404 = vrsqrt.f32 %v62_v42  ;;  %vm86_vm2 = vcmp.eq.f32.partialorder %v62_v42, inf  ;;  %v89_v2 = vand.u32 2147483648, %v62_v42  ;;  %vm88_vm3 = vcmp.eq.f32.partialorder %v62_v42, 0.0 }
  0x99   :  { %v559_v47 = vpop.xlane.xlu1 %70 }
  0x9a   :  { %406 = vrsqrt.f32 %v559_v47  ;;  %v65_v48 = vpop.xlane.xlu0 %64  ;;  %vm107_vm8 = vcmp.eq.f32.partialorder %v559_v47, inf  ;;  %v110_v33 = vand.u32 2147483648, %v559_v47  ;;  %vm109_vm9 = vcmp.eq.f32.partialorder %v559_v47, 0.0 }
  0x9b   :  { %408 = vrsqrt.f32 %v65_v48  ;;  %vm93_vm4 = vcmp.eq.f32.partialorder %v65_v48, inf  ;;  %v96_v16 = vand.u32 2147483648, %v65_v48  ;;  %vm95_vm6 = vcmp.eq.f32.partialorder %v65_v48, 0.0 }
  0x9d   :  { %v577_v60 = vpop.xlane.xlu1 %76 }
  0x9e   :  { %v568_v53 = vpop.xlane.xlu0 %73  ;;  %vm121_vm11 = vcmp.eq.f32.partialorder %v577_v60, inf  ;;  %v124_v46 = vand.u32 2147483648, %v577_v60  ;;  %vm123_vm13 = vcmp.eq.f32.partialorder %v577_v60, 0.0 }
  0x9f   :  { %410 = vrsqrt.f32 %v568_v53  ;;  %vm114_vm10 = vcmp.eq.f32.partialorder %v568_v53, inf  ;;  %vm116_vm12 = vcmp.eq.f32.partialorder %v568_v53, 0.0 }
  0xa0   :  { %v403_v59 = vpop.eup %402  ;;  %412 = vrsqrt.f32 %v577_v60 }
  0xa1   :  { %v405_v61 = vpop.eup %404  ;;  %v99_v8 = vmul.f32 %v403_v59, %v544_v41  ;;  %v596_v18 = vpop.xlane.xlu1 %82 }
  0xa2   :  { %v85_v63 = vmul.f32 %v405_v61, %v62_v42  ;;  %v585_v6 = vpop.xlane.xlu0 %79  ;;  %vm135_vm0 = vcmp.eq.f32.partialorder %v596_v18, inf  ;;  %v138_v61 = vand.u32 2147483648, %v596_v18 }
  0xa3   :  { %414 = vrsqrt.f32 %v585_v6  ;;  %v101_v20 = vsel %vm100_vm5, %v544_v41, %v99_v8  ;;  %v117_v41 = vand.u32 2147483648, %v568_v53  ;;  %vm128_vm14 = vcmp.eq.f32.partialorder %v585_v6, inf }
  0xa4   :  { %v407_v5 = vpop.eup %406  ;;  %v87_v7 = vsel %vm86_vm2, %v62_v42, %v85_v63  ;;  %416 = vrsqrt.f32 %v596_v18  ;;  %v104_v27 = vsel %vm102_vm7, %v103_v24, %v101_v20  ;;  %v131_v54 = vand.u32 2147483648, %v585_v6 }
  0xa5   :  { %v409_v9 = vpop.eup %408  ;;  %v90_v10 = vsel %vm88_vm3, %v89_v2, %v87_v7  ;;  %v106_v21 = vmul.f32 %v407_v5, %v559_v47  ;;  %v615_v34 = vmul.f32 %v180_v28, %v104_v27  ;;  %vm130_vm15 = vcmp.eq.f32.partialorder %v585_v6, 0.0  ;;  %v185_v2 = vld [vmem:[%s770_s6 + $0x38] sm:$0xff] }
  0xa6   :  { %v588_v12 = vmul.f32 %v178_v3, %v90_v10  ;;  %v92_v13 = vmul.f32 %v409_v9, %v65_v48  ;;  %vm137_vm2 = vcmp.eq.f32.partialorder %v596_v18, 0.0  ;;  %v169_v5 = vadd.f32 %v168_v4, %v167_v0 }
  0xa7   :  { %v108_v30 = vsel %vm107_vm8, %v559_v47, %v106_v21  ;;  %vm195_vm5 = vcmask 516096  }
  0xa8   :  { %212 = vperm.xlu0 %400, %v588_v12   ;;  %v94_v19 = vsel %vm93_vm4, %v65_v48, %v92_v13  ;;  %v111_v36 = vsel %vm109_vm9, %v110_v33, %v108_v30  ;;  %418 = vrsqrt.f32 %v169_v5  ;;  %vm172_vm3 = vcmp.eq.f32.partialorder %v169_v5, inf }
  0xa9   :  { %v411_v22 = vpop.eup %410  ;;  %v97_v23 = vsel %vm95_vm6, %v96_v16, %v94_v19  ;;  %v627_v42 = vmul.f32 %v181_v37, %v111_v36  ;;  %v175_v8 = vand.u32 2147483648, %v169_v5  ;;  %vm174_vm4 = vcmp.eq.f32.partialorder %v169_v5, 0.0 }
  0xaa   :  { %v602_v25 = vmul.f32 %v179_v17, %v97_v23  ;;  %v113_v31 = vmul.f32 %v411_v22, %v568_v53  ;;  %v413_v32 = vpop.eup %412  ;;  %v207_v16 = vshrl.u32 %v206_v15, 7 }
  0xab   :  { %v120_v39 = vmul.f32 %v413_v32, %v577_v60 }
  0xac   :  { %217 = vperm.xlu1 %401, %v602_v25   ;;  %v115_v38 = vsel %vm114_vm10, %v568_v53, %v113_v31  ;;  %v183_v53 = vld [vmem:[%s770_s6 + $0x28] sm:$0xff]  ;;  %v208_v17 = vsub.s32 0, %v207_v16 }
  0xad   :  { %v415_v40 = vpop.eup %414  ;;  %v118_v44 = vsel %vm116_vm12, %v117_v41, %v115_v38  ;;  %v122_v47 = vsel %vm121_vm11, %v577_v60, %v120_v39  ;;  %v184_v60 = vld [vmem:[%s770_s6 + $0x30] sm:$0xff] }
  0xae   :  { %v127_v48 = vmul.f32 %v415_v40, %v585_v6  ;;  %v417_v49 = vpop.eup %416  ;;  %v639_v50 = vmul.f32 %v182_v45, %v118_v44  ;;  %v125_v52 = vsel %vm123_vm13, %v124_v46, %v122_v47 }
  0xaf   :  { %v134_v56 = vmul.f32 %v417_v49, %v596_v18  ;;  %v650_v57 = vmul.f32 %v183_v53, %v125_v52 }
  0xb0   :  { %222 = vperm.xlu1 %401, %v615_v34   ;;  %v129_v55 = vsel %vm128_vm14, %v585_v6, %v127_v48 }
  0xb1   :  { %v132_v59 = vsel %vm130_vm15, %v131_v54, %v129_v55  ;;  %v136_v62 = vsel %vm135_vm0, %v596_v18, %v134_v56  ;;  %vm290_vm15 = vcmp.gt.f32.partialorder %v588_v12, 0.0  ;;  %vm291_vm0 = vcmp.gt.f32.partialorder %v602_v25, 0.0 }
  0xb2   :  { %v659_v63 = vmul.f32 %v184_v60, %v132_v59  ;;  %v139_v1 = vsel %vm137_vm2, %v138_v61, %v136_v62  ;;  %v419_v6 = vpop.eup %418 }
  0xb3   :  { %v665_v3 = vmul.f32 %v185_v2, %v139_v1  ;;  %v171_v7 = vmul.f32 %v419_v6, %v169_v5 }
  0xb4   :  { %227 = vperm.xlu1 %401, %v627_v42  }
  0xb5   :  { %v173_v9 = vsel %vm172_vm3, %v169_v5, %v171_v7 }
  0xb6   :  { %v668_v10 = vsel %vm174_vm4, %v175_v8, %v173_v9 }
  0xb7   :  { %v186_v13 = vmul.f32 %v673_v11, %v668_v10 }
  0xb8   :  { %232 = vperm.xlu1 %401, %v639_v50  }
  0xb9   :  { %v196_v14 = vsel %vm195_vm5, %v186_v13, 0.0  ;;  %v209_v18 = vrot.slane %v186_v13, %v208_v17 }
  0xbc   :  { %237 = vperm.xlu1 %401, %v650_v57  }
  0xc0   :  { %242 = vperm.xlu1 %401, %v659_v63  }
  0xc4   :  { %247 = vperm.xlu1 %401, %v665_v3  }
  0xe8   :  { %197 = vadd.xlane.f32.xlu1 %v196_v14 }
 0x127   :  { %v213_v19 = vpop.permute.xlu0 %212 }
 0x128   :  { %vm250_vm6 = vcmp.le.f32.partialorder %v209_v18, %v213_v19 }
 0x129   :  { %v258_v20 = vsel %vm250_vm6, %v209_v18, 0.0 }
 0x12a   :  { %v266_v21 = vsel %vm156_vm1, %v258_v20, 0.0 }
 0x12b   :  { %v218_v22 = vpop.permute.xlu1 %217  ;;  %267 = vadd.xlane.f32.xlu0 %v266_v21 }
 0x12c   :  { %vm251_vm7 = vcmp.le.f32.partialorder %v209_v18, %v218_v22 }
 0x12d   :  { %v259_v23 = vsel %vm251_vm7, %v209_v18, 0.0  ;;  %vm295_vm7 = vcmp.gt.f32.partialorder %v650_v57, 0.0 }
 0x12e   :  { %v269_v24 = vsel %vm156_vm1, %v259_v23, 0.0 }
 0x12f   :  { %v223_v26 = vpop.permute.xlu1 %222  ;;  %270 = vadd.xlane.f32.xlu0 %v269_v24 }
 0x130   :  { %vm252_vm8 = vcmp.le.f32.partialorder %v209_v18, %v223_v26 }
 0x131   :  { %v260_v27 = vsel %vm252_vm8, %v209_v18, 0.0 }
 0x132   :  { %v272_v28 = vsel %vm156_vm1, %v260_v27, 0.0 }
 0x133   :  { %v228_v29 = vpop.permute.xlu1 %227  ;;  %273 = vadd.xlane.f32.xlu1 %v272_v28 }
 0x134   :  { %vm253_vm9 = vcmp.le.f32.partialorder %v209_v18, %v228_v29 }
 0x135   :  { %v261_v30 = vsel %vm253_vm9, %v209_v18, 0.0  ;;  %vm292_vm9 = vcmp.gt.f32.partialorder %v615_v34, 0.0 }
 0x136   :  { %v275_v31 = vsel %vm156_vm1, %v261_v30, 0.0 }
 0x137   :  { %v233_v32 = vpop.permute.xlu1 %232  ;;  %276 = vadd.xlane.f32.xlu0 %v275_v31 }
 0x138   :  { %vm254_vm10 = vcmp.le.f32.partialorder %v209_v18, %v233_v32 }
 0x139   :  { %v262_v33 = vsel %vm254_vm10, %v209_v18, 0.0 }
 0x13a   :  { %v278_v35 = vsel %vm156_vm1, %v262_v33, 0.0 }
 0x13b   :  { %v238_v36 = vpop.permute.xlu1 %237  ;;  %279 = vadd.xlane.f32.xlu1 %v278_v35 }
 0x13c   :  { %vm255_vm11 = vcmp.le.f32.partialorder %v209_v18, %v238_v36 }
 0x13d   :  { %v263_v37 = vsel %vm255_vm11, %v209_v18, 0.0 }
 0x13e   :  { %v281_v38 = vsel %vm156_vm1, %v263_v37, 0.0 }
 0x13f   :  { %v243_v39 = vpop.permute.xlu1 %242  ;;  %282 = vadd.xlane.f32.xlu0 %v281_v38 }
 0x140   :  { %vm256_vm12 = vcmp.le.f32.partialorder %v209_v18, %v243_v39 }
 0x141   :  { %v264_v40 = vsel %vm256_vm12, %v209_v18, 0.0 }
 0x142   :  { %v284_v41 = vsel %vm156_vm1, %v264_v40, 0.0 }
 0x143   :  { %285 = vadd.xlane.f32.xlu1 %v284_v41  ;;  %v248_v43 = vpop.permute.xlu1 %247 }
 0x144   :  { %vm257_vm13 = vcmp.le.f32.partialorder %v209_v18, %v248_v43 }
 0x145   :  { %v265_v44 = vsel %vm257_vm13, %v209_v18, 0.0  ;;  %vm294_vm13 = vcmp.gt.f32.partialorder %v639_v50, 0.0 }
 0x146   :  { %v287_v45 = vsel %vm156_vm1, %v265_v44, 0.0 }
 0x147   :  { %288 = vadd.xlane.f32.xlu0 %v287_v45 }
 0x175   :  { %v198_v46 = vpop.xlane.xlu1 %197 }
 0x176   :  { %v199_v47 = vrot.slane %v198_v46, 4 }
 0x178   :  { %v200_v48 = vadd.f32 %v199_v47, %v198_v46  ;;  %v360_v46 = vld [vmem:[%s768_s4] sm:$0x1] }
 0x17a   :  { %v201_v49 = vrot.slane %v200_v48, 2 }
 0x17c   :  { %v202_v51 = vadd.f32 %v201_v49, %v200_v48 }
 0x17e   :  { %v203_v52 = vrot.slane %v202_v51, 1 }
 0x180   :  { %v204_v53 = vadd.f32 %v203_v52, %v202_v51 }
 0x182   :  { %392 = vpush %v204_v53 }
 0x1b3   :  { %s393_s5 = spop %392 }
 0x1b4   :  { %v306_v59 = vstv %s393_s5 }
 0x1b8   :  { %v268_v54 = vpop.xlane.xlu0 %267 }
 0x1b9   :  { %v298_v58 = vmul.f32 2.0, %v268_v54 }
 0x1bb   :  { %vm307_vm1 = vcmp.ge.f32.partialorder %v298_v58, %v306_v59 }
 0x1bc   :  { %v271_v55 = vpop.xlane.xlu0 %270  ;;  %vm688_vm3 = vmand %vm290_vm15, %vm307_vm1  ;;  %vm293_vm1 = vcmp.gt.f32.partialorder %v627_v42, 0.0 }
 0x1bd   :  { %v299_v60 = vmul.f32 2.0, %v271_v55 }
 0x1bf   :  { %vm308_vm14 = vcmp.ge.f32.partialorder %v299_v60, %v306_v59 }
 0x1c0   :  { %v274_v56 = vpop.xlane.xlu1 %273  ;;  %vm692_vm4 = vmand %vm291_vm0, %vm308_vm14  ;;  %vm296_vm0 = vcmp.gt.f32.partialorder %v659_v63, 0.0 }
 0x1c1   :  { %v300_v0 = vmul.f32 2.0, %v274_v56  ;;  %v324_v19 = vsel %vm692_vm4, %v602_v25, inf  ;;  %v323_v25 = vsel %vm688_vm3, %v588_v12, inf  ;;  %vm376_vm3 = vcmask 0  }
 0x1c3   :  { %vm309_vm2 = vcmp.ge.f32.partialorder %v300_v0, %v306_v59 }
 0x1c4   :  { %v277_v61 = vpop.xlane.xlu0 %276  ;;  %vm702_vm12 = vmand %vm292_vm9, %vm309_vm2 }
 0x1c5   :  { %v301_v2 = vmul.f32 2.0, %v277_v61 }
 0x1c7   :  { %vm310_vm10 = vcmp.ge.f32.partialorder %v301_v2, %v306_v59 }
 0x1c8   :  { %v280_v62 = vpop.xlane.xlu1 %279  ;;  %vm712_vm15 = vmand %vm293_vm1, %vm310_vm10 }
 0x1c9   :  { %v302_v1 = vmul.f32 2.0, %v280_v62  ;;  %v326_v24 = vsel %vm712_vm15, %v627_v42, inf }
 0x1cb   :  { %vm311_vm6 = vcmp.ge.f32.partialorder %v302_v1, %v306_v59 }
 0x1cc   :  { %v283_v4 = vpop.xlane.xlu0 %282  ;;  %vm708_vm14 = vmand %vm294_vm13, %vm311_vm6  ;;  %vm297_vm6 = vcmp.gt.f32.partialorder %v665_v3, 0.0 }
 0x1cd   :  { %v303_v5 = vmul.f32 2.0, %v283_v4  ;;  %v327_v20 = vsel %vm708_vm14, %v639_v50, inf }
 0x1cf   :  { %vm312_vm8 = vcmp.ge.f32.partialorder %v303_v5, %v306_v59 }
 0x1d0   :  { %vm698_vm11 = vmand %vm295_vm7, %vm312_vm8  ;;  %v286_v9 = vpop.xlane.xlu1 %285  ;;  %vm331_vm7 = vcmask 7168  }
 0x1d1   :  { %v304_v14 = vmul.f32 2.0, %v286_v9  ;;  %v328_v17 = vsel %vm698_vm11, %v650_v57, inf  ;;  %v325_v57 = vsel %vm702_vm12, %v615_v34, inf  ;;  %v333_v50 = vsel %vm331_vm7, %v324_v19, inf }
 0x1d2   :  { %v338_v23 = vsel %vm331_vm7, %v328_v17, inf  ;;  %v334_v34 = vsel %vm331_vm7, %v325_v57, inf  ;;  %v335_v29 = vsel %vm331_vm7, %v326_v24, inf  ;;  %v332_v30 = vsel %vm331_vm7, %v323_v25, inf }
 0x1d3   :  { %vm313_vm2 = vcmp.ge.f32.partialorder %v304_v14, %v306_v59  ;;  %v339_v28 = vmin.f32 %v333_v50, %v338_v23 }
 0x1d4   :  { %vm321_vm8 = vmand %vm296_vm0, %vm313_vm2  ;;  %v289_v18 = vpop.xlane.xlu0 %288 }
 0x1d5   :  { %v329_v21 = vsel %vm321_vm8, %v659_v63, inf  ;;  %v305_v22 = vmul.f32 2.0, %v289_v18  ;;  %v336_v63 = vsel %vm331_vm7, %v327_v20, inf }
 0x1d6   :  { %v340_v26 = vsel %vm331_vm7, %v329_v21, inf  ;;  %v337_v31 = vmin.f32 %v332_v30, %v336_v63 }
 0x1d7   :  { %vm314_vm4 = vcmp.ge.f32.partialorder %v305_v22, %v306_v59  ;;  %v341_v12 = vmin.f32 %v334_v34, %v340_v26 }
 0x1d8   :  { %vm322_vm9 = vmand %vm297_vm6, %vm314_vm4  ;;  %v344_v33 = vmin.f32 %v337_v31, %v339_v28 }
 0x1d9   :  { %v330_v27 = vsel %vm322_vm9, %v665_v3, inf }
 0x1da   :  { %v342_v42 = vsel %vm331_vm7, %v330_v27, inf }
 0x1db   :  { %v343_v32 = vmin.f32 %v335_v29, %v342_v42 }
 0x1dd   :  { %v345_v35 = vmin.f32 %v341_v12, %v343_v32 }
 0x1df   :  { %v346_v36 = vmin.f32 %v344_v33, %v345_v35 }
 0x1e1   :  { %347 = vmin.xlane.f32.xlu1 %v346_v36 }
 0x26e   :  { %v348_v37 = vpop.xlane.xlu1 %347 }
 0x26f   :  { %v349_v38 = vrot.slane %v348_v37, 4 }
 0x271   :  { %v350_v39 = vmin.f32 %v348_v37, %v349_v38 }
 0x273   :  { %v351_v3 = vrot.slane %v350_v39, 2 }
 0x275   :  { %v352_v40 = vmin.f32 %v350_v39, %v351_v3 }
 0x277   :  { %v353_v41 = vrot.slane %v352_v40, 1 }
 0x279   :  { %v354_v43 = vmin.f32 %v352_v40, %v353_v41 }
 0x27b   :  { %394 = vpush %v354_v43 }
 0x2ac   :  { %s395_s6 = spop %394 }
 0x2ad   :  { %v356_v44 = vstv %s395_s6 }
 0x2ae   :  { %420 = vrcp.f32 %v356_v44 }
 0x2b8   :  { %v421_v45 = vpop.eup %420 }
 0x2b9   :  { %v359_v47 = vmul.f32 %v421_v45, %v668_v10 }
 0x2bb   :  { %v361_v48 = vsub.f32 %v359_v47, %v360_v46 }
 0x2bd   :  { %v362_v49 = vand.u32 2147483647, %v361_v48 }
 0x2bf   :  { %v363_v51 = vmul.f32 %v362_v49, %v673_v11 }
 0x2c1   :  { %v364_v52 = vsel %vm195_vm5, %v363_v51, 0.0 }
 0x2c2   :  { %365 = vadd.xlane.f32.xlu0 %v364_v52 }
 0x34f   :  { %v366_v53 = vpop.xlane.xlu0 %365 }
 0x350   :  { %v367_v54 = vrot.slane %v366_v53, 4 }
 0x352   :  { %v368_v55 = vadd.f32 %v367_v54, %v366_v53 }
 0x354   :  { %v369_v56 = vrot.slane %v368_v55, 2 }
 0x356   :  { %v370_v58 = vadd.f32 %v369_v56, %v368_v55 }
 0x358   :  { %v371_v59 = vrot.slane %v370_v58, 1 }
 0x35a   :  { %v372_v60 = vadd.f32 %v371_v59, %v370_v58 }
 0x35c   :  { %396 = vpush %v372_v60 }
 0x38d   :  { %s397_s4 = spop %396 }
 0x38e   :  { %v374_v61 = vstv %s397_s4 }
 0x38f   :  { %v375_v10 = vmul.f32 0.017857144, %v374_v61 }
 0x391   :  { %377 = vst.msk [vmem:[#allocation2] sm:$0x1] %vm376_vm3, %v375_v10 }
 0x392   :  { %433 = shalt.err (!%p430_p4)
}
 0x393   :  { %s434_s23 = scalar_lea.hbm %s771_s7, 16 }
 0x394   :  { %p435_p5 = scmp.ne.s32.totalorder %s771_s7, %s434_s23  ;;  %p438_p6 = scmp.lt.u32.totalorder %s434_s23, %s771_s7 }
 0x396   :  { %p440_p7 = pnand %p438_p6, %p435_p5 }
 0x398   :  { %443 = shalt.err (!%p440_p7)
}
 0x399   :  { %387 = dma.vmem_to_hbm [thread:$0]  %s385_s18, 16, %s771_s7, [#allocation3]  }
 0x39a   :  { %444 = dma.done.wait [#allocation3], 16  }
 0x39b   :  { %445 = vsyncadd [#allocation3], 4294967280 }
 0x39c   :  { %391 = vsyncpa [#allocation3], 1 }

</bundles_post_ra>
